<compile_context>
chip_gen: v6e
topology: v6e:2x2x1
jax: 0.10.0
libtpu: 0.0.40
codegen_flags: <defaults>
</compile_context>

<pallas_src>
import jax
import jax.numpy as jnp
from jax.experimental import pallas as pl
from jax.experimental.pallas import tpu as pltpu

LANE = 128
SUBLANE = 8
H1, H2 = 20, 10  # SAE hidden sizes (fc1 -> 20, fc2 -> 10, fc3 -> 20)


def _round_up(n, m):
    return (n + m - 1) // m * m


def _tpu_vmem_capacity_bytes():
    try:
        return int(pltpu.get_tpu_info().vmem_capacity_bytes)
    except Exception:
        return 64 * 1024 * 1024  # conservative fallback: smallest (v7x) VMEM


def _vmem_tile_budget_bytes():
    cap = _tpu_vmem_capacity_bytes()
    # Leave ~32 MiB headroom: 64 MiB chips (v7x) -> 32 MiB tile budget,
    # 128 MiB chips (v5e/v6e) -> 96 MiB tile budget.
    return max(cap - (32 << 20), cap // 2)


def _sigmoid(z):
    # Stable sigmoid; exp and the approximate reciprocal both go to the EUP
    # (keeps the VALU slot free), never produces an intermediate inf.
    e = jnp.exp(-jnp.abs(z))
    r = pl.reciprocal(1.0 + e, approx=True)
    return jnp.where(z >= 0, r, e * r)


# --------------------------------------------------------------------------
# Fused single-call path (moderate nb_movies): one (tm, N) block per step.
# --------------------------------------------------------------------------
def _sae_fused_kernel(x_ref,
                      w1_ref, b1_ref,
                      w2_ref, b2_ref,
                      w3_ref, b3_ref,
                      w4_ref, b4_ref,
                      o_ref):
    x = x_ref[...]
    h1 = _sigmoid(jnp.dot(x, w1_ref[...],
                          preferred_element_type=jnp.float32) + b1_ref[...])
    h2 = _sigmoid(jnp.dot(h1, w2_ref[...],
                          preferred_element_type=jnp.float32) + b2_ref[...])
    h3 = _sigmoid(jnp.dot(h2, w3_ref[...],
                          preferred_element_type=jnp.float32) + b3_ref[...])
    out = jnp.dot(h3.astype(w4_ref.dtype), w4_ref[...],
                  preferred_element_type=jnp.float32) + b4_ref[...]
    o_ref[...] = out.astype(o_ref.dtype)


def _sae_forward_fused(x, w1, b1, w2, b2, w3, b3, w4, b4, *,
                       out_dtype, block_batch, tm_cap, param_bytes):
    B, N = x.shape
    cap = _tpu_vmem_capacity_bytes()
    xb = x.dtype.itemsize
    ob = jnp.dtype(out_dtype).itemsize

    if block_batch is None:
        tm = max(SUBLANE, min(2048, tm_cap))
        # Keep >= ~4 grid steps when the batch allows it: DMA/compute overlap
        # and work for both TensorCores on v7x.
        tm = min(tm, max(256, pl.cdiv(B, 4)))
    else:
        tm = int(block_batch)
    tm = min(tm, _round_up(B, SUBLANE))
    tm = max(SUBLANE, (tm // SUBLANE) * SUBLANE)

    grid = (pl.cdiv(B, tm),)

    def resident(arr):
        # Full-array block, constant index -> DMA'd once, stays in VMEM.
        # TODO(synk): these still get 2 pipeline buffers each; switch to
        # pipeline_mode=pl.Buffered(1) once verified to lower on all targets.
        return pl.BlockSpec(arr.shape, lambda i: (0, 0))

    # VMEM need: double-buffered x/out tiles + f32 in-kernel intermediates
    # (fc4 result before the bias add + output cast) + double-buffered params.
    need = tm * N * (2 * xb + 2 * ob + 2 * 4) + 2 * param_bytes
    vmem_limit = int(min(cap, max(48 << 20, need + (16 << 20))))

    cost = pl.CostEstimate(
        flops=int(2 * B * (N * H1 + H1 * H2 + H2 * H1 + H1 * N)),
        transcendentals=int(B * (H1 + H2 + H1)),
        bytes_accessed=int(B * N * xb + B * N * ob + param_bytes))

    return pl.pallas_call(
        _sae_fused_kernel,
        out_shape=jax.ShapeDtypeStruct((B, N), out_dtype),
        grid=grid,
        in_specs=[
            pl.BlockSpec((tm, N), lambda i: (i, 0)),
            resident(w1), resident(b1),
            resident(w2), resident(b2),
            resident(w3), resident(b3),
            resident(w4), resident(b4),
        ],
        out_specs=pl.BlockSpec((tm, N), lambda i: (i, 0)),
        compiler_params=pltpu.CompilerParams(
            dimension_semantics=("parallel",),
            vmem_limit_bytes=vmem_limit),
        cost_estimate=cost,
    )(x, w1, b1, w2, b2, w3, b3, w4, b4)


# --------------------------------------------------------------------------
# Chunked path (large nb_movies): K-tiled encoder + N-tiled decoder.
# --------------------------------------------------------------------------
def _sae_forward_chunked(x, w1, b1, w2, b2, w3, b3, w4, b4, *,
                         out_dtype, block_batch, movie_block, budget):
    B, N = x.shape
    cap = _tpu_vmem_capacity_bytes()
    xb = x.dtype.itemsize
    ob = jnp.dtype(out_dtype).itemsize
    wb = w1.dtype.itemsize

    tk = int(movie_block) if movie_block is not None else 1024
    tk = max(LANE, _round_up(tk, LANE))

    if block_batch is None:
        tm = min(512, _round_up(B, SUBLANE))
        while tm > SUBLANE and tm * tk * (2 * max(xb, ob) + 4) > budget:
            tm //= 2
    else:
        tm = int(block_batch)
    tm = max(SUBLANE, (min(tm, _round_up(B, SUBLANE)) // SUBLANE) * SUBLANE)

    n_btiles = pl.cdiv(B, tm)
    n_chunks = pl.cdiv(N, tk)
    ragged = (N % tk) != 0

    small_param_bytes = sum(int(a.size) * a.dtype.itemsize
                            for a in (b1, w2, b2, w3, b3))

    # ---- Encoder: h3 = sigmoid(fc3(sigmoid(fc2(sigmoid(fc1(x)))))) ----
    def enc_kernel(x_ref, w1_ref, b1_ref, w2_ref, b2_ref, w3_ref, b3_ref,
                   h3_ref, acc_ref):
        k = pl.program_id(1)

        @pl.when(k == 0)
        def _():
            acc_ref[...] = jnp.zeros_like(acc_ref)

        xt = x_ref[...]
        w1t = w1_ref[...]
        if ragged:
            # Zero the out-of-range movie columns/rows of the last (clipped)
            # chunk so undefined tail data never reaches the accumulator.
            col = k * tk + jax.lax.broadcasted_iota(jnp.int32, xt.shape, 1)
            xt = jnp.where(col < N, xt, jnp.zeros_like(xt))
            row = k * tk + jax.lax.broadcasted_iota(jnp.int32, w1t.shape, 0)
            w1t = jnp.where(row < N, w1t, jnp.zeros_like(w1t))
        acc_ref[...] += jnp.dot(xt, w1t, preferred_element_type=jnp.float32)

        @pl.when(k == pl.num_programs(1) - 1)
        def _():
            h1 = _sigmoid(acc_ref[...] + b1_ref[...])
            h2 = _sigmoid(jnp.dot(h1, w2_ref[...],
                                  preferred_element_type=jnp.float32) + b2_ref[...])
            h3 = _sigmoid(jnp.dot(h2, w3_ref[...],
                                  preferred_element_type=jnp.float32) + b3_ref[...])
            h3_ref[...] = h3

    enc_need = (2 * tm * tk * xb + 2 * tk * H1 * wb + 2 * small_param_bytes
                + 2 * tm * H1 * 4 + tm * tk * 4)
    enc_cost = pl.CostEstimate(
        flops=int(2 * B * (N * H1 + H1 * H2 + H2 * H1)),
        transcendentals=int(B * (H1 + H2 + H1)),
        bytes_accessed=int(B * N * xb + B * H1 * 4
                           + int(w1.size) * wb + small_param_bytes))

    h3 = pl.pallas_call(
        enc_kernel,
        out_shape=jax.ShapeDtypeStruct((B, H1), jnp.float32),
        grid=(n_btiles, n_chunks),
        in_specs=[
            pl.BlockSpec((tm, tk), lambda i, k: (i, k)),
            pl.BlockSpec((tk, H1), lambda i, k: (k, 0)),
            pl.BlockSpec(b1.shape, lambda i, k: (0, 0)),
            pl.BlockSpec(w2.shape, lambda i, k: (0, 0)),
            pl.BlockSpec(b2.shape, lambda i, k: (0, 0)),
            pl.BlockSpec(w3.shape, lambda i, k: (0, 0)),
            pl.BlockSpec(b3.shape, lambda i, k: (0, 0)),
        ],
        out_specs=pl.BlockSpec((tm, H1), lambda i, k: (i, 0)),
        scratch_shapes=[pltpu.VMEM((tm, H1), jnp.float32)],
        compiler_params=pltpu.CompilerParams(
            dimension_semantics=("parallel", "arbitrary"),
            vmem_limit_bytes=int(min(cap, max(48 << 20, enc_need + (16 << 20))))),
        cost_estimate=enc_cost,
    )(x, w1, b1, w2, b2, w3, b3)

    # ---- Decoder: out = fc4(h3), tiled over movie chunks ----
    def dec_kernel(h3_ref, w4_ref, b4_ref, o_ref):
        h3t = h3_ref[...].astype(w4_ref.dtype)
        out = jnp.dot(h3t, w4_ref[...],
                      preferred_element_type=jnp.float32) + b4_ref[...]
        o_ref[...] = out.astype(o_ref.dtype)

    dec_need = (2 * tm * tk * ob + tm * tk * 4 + 2 * H1 * tk * wb
                + 2 * tk * 4 + 2 * tm * H1 * 4)
    dec_cost = pl.CostEstimate(
        flops=int(2 * B * H1 * N),
        transcendentals=0,
        bytes_accessed=int(B * H1 * 4 + B * N * ob + int(w4.size) * wb + N * 4))

    out = pl.pallas_call(
        dec_kernel,
        out_shape=jax.ShapeDtypeStruct((B, N), out_dtype),
        grid=(n_btiles, n_chunks),
        in_specs=[
            pl.BlockSpec((tm, H1), lambda i, j: (i, 0)),
            pl.BlockSpec((H1, tk), lambda i, j: (0, j)),
            pl.BlockSpec((1, tk), lambda i, j: (0, j)),
        ],
        out_specs=pl.BlockSpec((tm, tk), lambda i, j: (i, j)),
        compiler_params=pltpu.CompilerParams(
            dimension_semantics=("parallel", "parallel"),
            vmem_limit_bytes=int(min(cap, max(48 << 20, dec_need + (16 << 20))))),
        cost_estimate=dec_cost,
    )(h3, w4, b4)
    return out


# --------------------------------------------------------------------------
# Public entry point.
# --------------------------------------------------------------------------
def sae_forward(x, params, *, out_dtype=None, block_batch=None,
                movie_block=None, force_chunked=None):
    """x: (B, nb_movies).  params: dict of w1..w4 (in,out) and b1..b4 (1,out).

    Output dtype defaults to x.dtype; pass x in bf16 (and/or out_dtype=bf16)
    to halve streamed HBM traffic when the surrounding model works in bf16.
    """
    B, N = x.shape
    out_dtype = jnp.dtype(out_dtype) if out_dtype is not None else x.dtype

    # Big weights stored in the activation dtype once (tiny one-time cast,
    # avoids a full (tm, N) in-kernel cast pass); biases stay f32 so they add
    # directly onto the f32 accumulator.
    w1 = params["w1"].astype(x.dtype)
    w4 = params["w4"].astype(x.dtype)
    w2 = params["w2"].astype(jnp.float32)
    w3 = params["w3"].astype(jnp.float32)
    b1 = params["b1"].astype(jnp.float32)
    b2 = params["b2"].astype(jnp.float32)
    b3 = params["b3"].astype(jnp.float32)
    b4 = params["b4"].astype(jnp.float32)

    budget = _vmem_tile_budget_bytes()
    xb = x.dtype.itemsize
    ob = jnp.dtype(out_dtype).itemsize
    param_bytes = sum(int(a.size) * a.dtype.itemsize
                      for a in (w1, b1, w2, b2, w3, b3, w4, b4))

    # Largest batch tile a full-movie-width block would allow (double-buffered
    # x/out tiles + f32 in-kernel intermediates + double-buffered params).
    per_row_full = N * (2 * xb + 2 * ob + 2 * 4)
    tm_cap = max(0, budget - 2 * param_bytes) // per_row_full

    if force_chunked is None:
        use_chunked = tm_cap < min(256, _round_up(B, SUBLANE))
    else:
        use_chunked = bool(force_chunked)

    if use_chunked:
        return _sae_forward_chunked(x, w1, b1, w2, b2, w3, b3, w4, b4,
                                    out_dtype=out_dtype,
                                    block_batch=block_batch,
                                    movie_block=movie_block,
                                    budget=budget)
    return _sae_forward_fused(x, w1, b1, w2, b2, w3, b3, w4, b4,
                              out_dtype=out_dtype,
                              block_batch=block_batch,
                              tm_cap=tm_cap,
                              param_bytes=param_bytes)


def init_params(key, nb_movies):
    """PyTorch nn.Linear-style init: U(-1/sqrt(in), 1/sqrt(in)) for W and b.
    Weights stored as (in_features, out_features)."""
    dims = [(nb_movies, H1), (H1, H2), (H2, H1), (H1, nb_movies)]
    params = {}
    keys = jax.random.split(key, 2 * len(dims))
    for i, (fan_in, fan_out) in enumerate(dims):
        bound = 1.0 / jnp.sqrt(jnp.float32(fan_in))
        w = jax.random.uniform(keys[2 * i], (fan_in, fan_out),
                               minval=-bound, maxval=bound, dtype=jnp.float32)
        b = jax.random.uniform(keys[2 * i + 1], (1, fan_out),
                               minval=-bound, maxval=bound, dtype=jnp.float32)
        params[f"w{i + 1}"] = w
        params[f"b{i + 1}"] = b
    return params


def sae_reference(x, params):
    h = jax.nn.sigmoid(x @ params["w1"] + params["b1"])
    h = jax.nn.sigmoid(h @ params["w2"] + params["b2"])
    h = jax.nn.sigmoid(h @ params["w3"] + params["b3"])
    return h @ params["w4"] + params["b4"]


if __name__ == "__main__":
    key = jax.random.PRNGKey(0)
    k_x1, k_p1, k_x2, k_p2 = jax.random.split(key, 4)

    # ---- Test 1: fused single-call path (small nb_movies) ----
    nb_movies, batch = 64, 8
    x = jax.random.uniform(k_x1, (batch, nb_movies),
                           minval=0.0, maxval=5.0, dtype=jnp.float32)
    params = init_params(k_p1, nb_movies)
    out = jax.block_until_ready(sae_forward(x, params))
    ref = sae_reference(x, params)
    assert out.shape == (batch, nb_movies)
    assert jnp.allclose(out, ref, atol=5e-2, rtol=5e-2), "fused path mismatch"

    # ---- Test 2: chunked encoder/decoder path (forced; exercises ragged
    #      movie chunks and a partial batch tile) ----
    nb_movies2, batch2 = 300, 24
    x2 = jax.random.uniform(k_x2, (batch2, nb_movies2),
                            minval=0.0, maxval=5.0, dtype=jnp.float32)
    params2 = init_params(k_p2, nb_movies2)
    out2 = jax.block_until_ready(
        sae_forward(x2, params2, force_chunked=True,
                    block_batch=16, movie_block=128))
    ref2 = sae_reference(x2, params2)
    assert out2.shape == (batch2, nb_movies2)
    assert jnp.allclose(out2, ref2, atol=5e-2, rtol=5e-2), "chunked path mismatch"

    print("KERNEL_OK")
</pallas_src>

<mosaic_0001>
module attributes {stable_mosaic.version = 11 : i64} {
  func.func @_sae_fused_kernel(%arg0: i32, %arg1: memref<8x64xf32, #tpu.memory_space<vmem>>, %arg2: memref<64x20xf32, #tpu.memory_space<vmem>>, %arg3: memref<1x20xf32, #tpu.memory_space<vmem>>, %arg4: memref<20x10xf32, #tpu.memory_space<vmem>>, %arg5: memref<1x10xf32, #tpu.memory_space<vmem>>, %arg6: memref<10x20xf32, #tpu.memory_space<vmem>>, %arg7: memref<1x20xf32, #tpu.memory_space<vmem>>, %arg8: memref<20x64xf32, #tpu.memory_space<vmem>>, %arg9: memref<1x64xf32, #tpu.memory_space<vmem>>, %arg10: memref<8x64xf32, #tpu.memory_space<vmem>>) attributes {dimension_semantics = [#tpu.dimension_semantics<parallel>], iteration_bounds = array<i64: 1>, scalar_prefetch = 0 : i64, scratch_operands = 0 : i64, tpu.core_type = #tpu.core_type<tc>, window_params = [{transform_indices = @transform_0, window_bounds = array<i64: 8, 64>}, {pipeline_mode = #tpu.pipeline_mode<synchronous>, transform_indices = @transform_1, window_bounds = array<i64: 64, 20>}, {pipeline_mode = #tpu.pipeline_mode<synchronous>, transform_indices = @transform_2, window_bounds = array<i64: 1, 20>}, {pipeline_mode = #tpu.pipeline_mode<synchronous>, transform_indices = @transform_3, window_bounds = array<i64: 20, 10>}, {pipeline_mode = #tpu.pipeline_mode<synchronous>, transform_indices = @transform_4, window_bounds = array<i64: 1, 10>}, {pipeline_mode = #tpu.pipeline_mode<synchronous>, transform_indices = @transform_5, window_bounds = array<i64: 10, 20>}, {pipeline_mode = #tpu.pipeline_mode<synchronous>, transform_indices = @transform_6, window_bounds = array<i64: 1, 20>}, {pipeline_mode = #tpu.pipeline_mode<synchronous>, transform_indices = @transform_7, window_bounds = array<i64: 20, 64>}, {pipeline_mode = #tpu.pipeline_mode<synchronous>, transform_indices = @transform_8, window_bounds = array<i64: 1, 64>}, {transform_indices = @transform_9, window_bounds = array<i64: 8, 64>}]} {
    %c0 = arith.constant 0 : index
    %c0_0 = arith.constant 0 : index
    %0 = vector.load %arg1[%c0, %c0_0] : memref<8x64xf32, #tpu.memory_space<vmem>>, vector<8x64xf32>
    %c0_1 = arith.constant 0 : index
    %c0_2 = arith.constant 0 : index
    %1 = vector.load %arg2[%c0_1, %c0_2] : memref<64x20xf32, #tpu.memory_space<vmem>>, vector<64x20xf32>
    %cst = arith.constant dense<0.000000e+00> : vector<8x20xf32>
    %2 = tpu.matmul %0, %1, %cst {dimension_numbers = #tpu.dot_dimension_numbers<[1], [0], [0], [1], [0, 0, 1, 1], [], []>} : vector<8x64xf32>, vector<64x20xf32>, vector<8x20xf32> -> vector<8x20xf32>
    %c0_3 = arith.constant 0 : index
    %c0_4 = arith.constant 0 : index
    %3 = vector.load %arg3[%c0_3, %c0_4] : memref<1x20xf32, #tpu.memory_space<vmem>>, vector<1x20xf32>
    %4 = vector.broadcast %3 : vector<1x20xf32> to vector<8x20xf32>
    %5 = arith.addf %2, %4 : vector<8x20xf32>
    %6 = math.absf %5 : vector<8x20xf32>
    %cst_5 = arith.constant 0.000000e+00 : f32
    %7 = vector.broadcast %cst_5 : f32 to vector<8x20xf32>
    %8 = arith.subf %7, %6 : vector<8x20xf32>
    %9 = math.exp %8 : vector<8x20xf32>
    %cst_6 = arith.constant 1.000000e+00 : f32
    %10 = vector.broadcast %cst_6 : f32 to vector<8x20xf32>
    %11 = arith.addf %10, %9 : vector<8x20xf32>
    %12 = tpu.reciprocal %11 {approx = true} : vector<8x20xf32> -> vector<8x20xf32>
    %cst_7 = arith.constant 0.000000e+00 : f32
    %13 = vector.broadcast %cst_7 : f32 to vector<8x20xf32>
    %14 = arith.cmpf oge, %5, %13 : vector<8x20xf32>
    %15 = arith.mulf %9, %12 : vector<8x20xf32>
    %16 = arith.select %14, %12, %15 : vector<8x20xi1>, vector<8x20xf32>
    %c0_8 = arith.constant 0 : index
    %c0_9 = arith.constant 0 : index
    %17 = vector.load %arg4[%c0_8, %c0_9] : memref<20x10xf32, #tpu.memory_space<vmem>>, vector<20x10xf32>
    %cst_10 = arith.constant dense<0.000000e+00> : vector<8x10xf32>
    %18 = tpu.matmul %16, %17, %cst_10 {dimension_numbers = #tpu.dot_dimension_numbers<[1], [0], [0], [1], [0, 0, 1, 1], [], []>} : vector<8x20xf32>, vector<20x10xf32>, vector<8x10xf32> -> vector<8x10xf32>
    %c0_11 = arith.constant 0 : index
    %c0_12 = arith.constant 0 : index
    %19 = vector.load %arg5[%c0_11, %c0_12] : memref<1x10xf32, #tpu.memory_space<vmem>>, vector<1x10xf32>
    %20 = vector.broadcast %19 : vector<1x10xf32> to vector<8x10xf32>
    %21 = arith.addf %18, %20 : vector<8x10xf32>
    %22 = math.absf %21 : vector<8x10xf32>
    %cst_13 = arith.constant 0.000000e+00 : f32
    %23 = vector.broadcast %cst_13 : f32 to vector<8x10xf32>
    %24 = arith.subf %23, %22 : vector<8x10xf32>
    %25 = math.exp %24 : vector<8x10xf32>
    %cst_14 = arith.constant 1.000000e+00 : f32
    %26 = vector.broadcast %cst_14 : f32 to vector<8x10xf32>
    %27 = arith.addf %26, %25 : vector<8x10xf32>
    %28 = tpu.reciprocal %27 {approx = true} : vector<8x10xf32> -> vector<8x10xf32>
    %cst_15 = arith.constant 0.000000e+00 : f32
    %29 = vector.broadcast %cst_15 : f32 to vector<8x10xf32>
    %30 = arith.cmpf oge, %21, %29 : vector<8x10xf32>
    %31 = arith.mulf %25, %28 : vector<8x10xf32>
    %32 = arith.select %30, %28, %31 : vector<8x10xi1>, vector<8x10xf32>
    %c0_16 = arith.constant 0 : index
    %c0_17 = arith.constant 0 : index
    %33 = vector.load %arg6[%c0_16, %c0_17] : memref<10x20xf32, #tpu.memory_space<vmem>>, vector<10x20xf32>
    %cst_18 = arith.constant dense<0.000000e+00> : vector<8x20xf32>
    %34 = tpu.matmul %32, %33, %cst_18 {dimension_numbers = #tpu.dot_dimension_numbers<[1], [0], [0], [1], [0, 0, 1, 1], [], []>} : vector<8x10xf32>, vector<10x20xf32>, vector<8x20xf32> -> vector<8x20xf32>
    %c0_19 = arith.constant 0 : index
    %c0_20 = arith.constant 0 : index
    %35 = vector.load %arg7[%c0_19, %c0_20] : memref<1x20xf32, #tpu.memory_space<vmem>>, vector<1x20xf32>
    %36 = vector.broadcast %35 : vector<1x20xf32> to vector<8x20xf32>
    %37 = arith.addf %34, %36 : vector<8x20xf32>
    %38 = math.absf %37 : vector<8x20xf32>
    %cst_21 = arith.constant 0.000000e+00 : f32
    %39 = vector.broadcast %cst_21 : f32 to vector<8x20xf32>
    %40 = arith.subf %39, %38 : vector<8x20xf32>
    %41 = math.exp %40 : vector<8x20xf32>
    %cst_22 = arith.constant 1.000000e+00 : f32
    %42 = vector.broadcast %cst_22 : f32 to vector<8x20xf32>
    %43 = arith.addf %42, %41 : vector<8x20xf32>
    %44 = tpu.reciprocal %43 {approx = true} : vector<8x20xf32> -> vector<8x20xf32>
    %cst_23 = arith.constant 0.000000e+00 : f32
    %45 = vector.broadcast %cst_23 : f32 to vector<8x20xf32>
    %46 = arith.cmpf oge, %37, %45 : vector<8x20xf32>
    %47 = arith.mulf %41, %44 : vector<8x20xf32>
    %48 = arith.select %46, %44, %47 : vector<8x20xi1>, vector<8x20xf32>
    %c0_24 = arith.constant 0 : index
    %c0_25 = arith.constant 0 : index
    %49 = vector.load %arg8[%c0_24, %c0_25] : memref<20x64xf32, #tpu.memory_space<vmem>>, vector<20x64xf32>
    %cst_26 = arith.constant dense<0.000000e+00> : vector<8x64xf32>
    %50 = tpu.matmul %48, %49, %cst_26 {dimension_numbers = #tpu.dot_dimension_numbers<[1], [0], [0], [1], [0, 0, 1, 1], [], []>} : vector<8x20xf32>, vector<20x64xf32>, vector<8x64xf32> -> vector<8x64xf32>
    %c0_27 = arith.constant 0 : index
    %c0_28 = arith.constant 0 : index
    %51 = vector.load %arg9[%c0_27, %c0_28] : memref<1x64xf32, #tpu.memory_space<vmem>>, vector<1x64xf32>
    %52 = vector.broadcast %51 : vector<1x64xf32> to vector<8x64xf32>
    %53 = arith.addf %50, %52 : vector<8x64xf32>
    %c0_29 = arith.constant 0 : index
    %c0_30 = arith.constant 0 : index
    %54 = vector.load %arg10[%c0_29, %c0_30] : memref<8x64xf32, #tpu.memory_space<vmem>>, vector<8x64xf32>
    tpu.vector_store %arg10[%c0_29, %c0_30], %53 {strides = array<i32>} : memref<8x64xf32, #tpu.memory_space<vmem>>, vector<8x64xf32>,
    return
  }
  func.func @transform_0(%arg0: i32) -> (i32, i32) {
    %c0_i32 = arith.constant 0 : i32
    %c0_i32_0 = arith.constant 0 : i32
    return %arg0, %c0_i32 : i32, i32
  }
  func.func @transform_1(%arg0: i32) -> (i32, i32) {
    %c0_i32 = arith.constant 0 : i32
    %c0_i32_0 = arith.constant 0 : i32
    %c0_i32_1 = arith.constant 0 : i32
    return %c0_i32, %c0_i32_0 : i32, i32
  }
  func.func @transform_2(%arg0: i32) -> (i32, i32) {
    %c0_i32 = arith.constant 0 : i32
    %c0_i32_0 = arith.constant 0 : i32
    %c0_i32_1 = arith.constant 0 : i32
    return %c0_i32, %c0_i32_0 : i32, i32
  }
  func.func @transform_3(%arg0: i32) -> (i32, i32) {
    %c0_i32 = arith.constant 0 : i32
    %c0_i32_0 = arith.constant 0 : i32
    %c0_i32_1 = arith.constant 0 : i32
    return %c0_i32, %c0_i32_0 : i32, i32
  }
  func.func @transform_4(%arg0: i32) -> (i32, i32) {
    %c0_i32 = arith.constant 0 : i32
    %c0_i32_0 = arith.constant 0 : i32
    %c0_i32_1 = arith.constant 0 : i32
    return %c0_i32, %c0_i32_0 : i32, i32
  }
  func.func @transform_5(%arg0: i32) -> (i32, i32) {
    %c0_i32 = arith.constant 0 : i32
    %c0_i32_0 = arith.constant 0 : i32
    %c0_i32_1 = arith.constant 0 : i32
    return %c0_i32, %c0_i32_0 : i32, i32
  }
  func.func @transform_6(%arg0: i32) -> (i32, i32) {
    %c0_i32 = arith.constant 0 : i32
    %c0_i32_0 = arith.constant 0 : i32
    %c0_i32_1 = arith.constant 0 : i32
    return %c0_i32, %c0_i32_0 : i32, i32
  }
  func.func @transform_7(%arg0: i32) -> (i32, i32) {
    %c0_i32 = arith.constant 0 : i32
    %c0_i32_0 = arith.constant 0 : i32
    %c0_i32_1 = arith.constant 0 : i32
    return %c0_i32, %c0_i32_0 : i32, i32
  }
  func.func @transform_8(%arg0: i32) -> (i32, i32) {
    %c0_i32 = arith.constant 0 : i32
    %c0_i32_0 = arith.constant 0 : i32
    %c0_i32_1 = arith.constant 0 : i32
    return %c0_i32, %c0_i32_0 : i32, i32
  }
  func.func @transform_9(%arg0: i32) -> (i32, i32) {
    %c0_i32 = arith.constant 0 : i32
    %c0_i32_0 = arith.constant 0 : i32
    return %arg0, %c0_i32 : i32, i32
  }
}

</mosaic_0001>

<bundles_post_ra>
// kernel: tpu_custom_call.1
= control target key start
LH: loop header
LB: loop body
LE: loop exit
PB: predicated region body
PF: predicated region fallthrough
CT: control target
= control target key end

     0   :  { %v538_v1 = vmov 0.0   ;;  %vm539_vm0 = vmmov 0   ;;  %s687_s0 = inlined_call_operand.vmem [shape: f32[8,64], index: 0, kind: input, shape index: {}]   ;;  %s688_s1 = inlined_call_operand.vmem [shape: f32[64,20], index: 1, kind: input, shape index: {}]   ;;  %s689_s2 = inlined_call_operand.vmem [shape: f32[1,20], index: 2, kind: input, shape index: {}]   ;;  %s690_s3 = inlined_call_operand.vmem [shape: f32[20,10], index: 3, kind: input, shape index: {}]   ;;  %s691_s4 = inlined_call_operand.vmem [shape: f32[1,10], index: 4, kind: input, shape index: {}]   ;;  %s692_s5 = inlined_call_operand.vmem [shape: f32[10,20], index: 5, kind: input, shape index: {}]   ;;  %s693_s6 = inlined_call_operand.vmem [shape: f32[1,20], index: 6, kind: input, shape index: {}]   ;;  %s694_s7 = inlined_call_operand.vmem [shape: f32[20,64], index: 7, kind: input, shape index: {}]   ;;  %s695_s8 = inlined_call_operand.vmem [shape: f32[1,64], index: 8, kind: input, shape index: {}]   ;;  %s696_s9 = inlined_call_operand.hbm [shape: f32[8,64], index: 9, kind: output, shape index: {}]  }
   0x1   :  { %v41_v0 = vld [vmem:[%s688_s1 + $0x38] sm:$0xff]  ;;  %457 = vmatprep.subr.mxu0 %v538_v1  ;;  %v40_v2 = vld [vmem:[%s688_s1 + $0x30] sm:$0xff]  ;;  %473 = vmatprep.mubr.msk.f32.mxu0 %vm539_vm0, %v538_v1  ;;  %v39_v3 = vld [vmem:[%s688_s1 + $0x28] sm:$0xff] }
   0x2   :  { %458 = vmatpush3.msra.mxu0 %v41_v0  ;;  %476 = vmatprep.subr.mxu1 %v538_v1 }
   0x3   :  { %459 = vmatprep.subr.mxu0 %v538_v1  ;;  %482 = vmatprep.mubr.msk.f32.mxu1 %vm539_vm0, %v538_v1 }
   0x4   :  { %14 = vsyncpa [#allocation3], 0  ;;  %460 = vmatpush3.msra.mxu0 %v40_v2  ;;  %v38_v4 = vld [vmem:[%s688_s1 + $0x20] sm:$0xff]  ;;  %v37_v5 = vld [vmem:[%s688_s1 + $0x18] sm:$0xff]  ;;  %vm49_vm1 = vcmask 523264   ;;  %vm146_vm2 = vcmask 1043456  }
   0x5   :  { %461 = vmatprep.subr.mxu0 %v538_v1  ;;  %v36_v6 = vld [vmem:[%s688_s1 + $0x10] sm:$0xff]  ;;  %v35_v7 = vld [vmem:[%s688_s1 + $0x8] sm:$0xff]  ;;  %v34_v8 = vld [vmem:[%s688_s1] sm:$0xff]  ;;  %vm142_vm3 = vcmask 162816   ;;  %vm242_vm5 = vcmask 1041408   ;;  %vm238_vm6 = vcmask 80896  }
   0x6   :  { %462 = vmatpush3.msra.mxu0 %v39_v3  ;;  %v33_v9 = vld [vmem:[%s687_s0] sm:$0xff]  ;;  %v134_v10 = vld [vmem:[%s690_s3 + $0x10] sm:$0xf]  ;;  %v133_v11 = vld [vmem:[%s690_s3 + $0x8] sm:$0xff] }
   0x7   :  { %463 = vmatprep.subr.mxu0 %v538_v1  ;;  %477 = vmatpush3.msk.msra.mxu1 %vm146_vm2, %v134_v10  ;;  %v132_v12 = vld [vmem:[%s690_s3] sm:$0xff]  ;;  %v230_v25 = vld [vmem:[%s692_s5 + $0x8] sm:$0x3]  ;;  %v327_v39 = vld [vmem:[%s694_s7 + $0x10] sm:$0xf] }
   0x8   :  { %464 = vmatpush3.msra.mxu0 %v38_v4  ;;  %478 = vmatprep.subr.mxu1 %v538_v1  ;;  %v426_v13 = vld [vmem:[%s689_s2] ss:$0 sm:$0xff]  ;;  %v326_v40 = vld [vmem:[%s694_s7 + $0x8] sm:$0xff] }
   0x9   :  { %465 = vmatprep.subr.mxu0 %v538_v1  ;;  %479 = vmatpush3.msra.mxu1 %v133_v11  ;;  %v229_v26 = vld [vmem:[%s692_s5] sm:$0xff] }
   0xa   :  { %466 = vmatpush3.msra.mxu0 %v37_v5  ;;  %480 = vmatprep.subr.mxu1 %v538_v1  ;;  %v428_v27 = vld [vmem:[%s691_s4] ss:$0 sm:$0xff] }
   0xb   :  { %467 = vmatprep.subr.mxu0 %v538_v1  ;;  %481 = vmatpush3.msra.mxu1 %v132_v12  ;;  %v325_v41 = vld [vmem:[%s694_s7] sm:$0xff] }
   0xc   :  { %468 = vmatpush3.msra.mxu0 %v36_v6  ;;  %485 = vmatprep.subr.mxu1 %v538_v1  ;;  %v431_v42 = vld [vmem:[%s693_s6] ss:$0 sm:$0xff]  ;;  %s540_s6 = smov [#allocation2]  }
   0xd   :  { %469 = vmatprep.subr.mxu0 %v538_v1  ;;  %v434_v54 = vld [vmem:[%s695_s8] ss:$0 sm:$0xff]  ;;  %s418_s23 = sshll.u32 %s540_s6, 4  ;;  %s419_s23 = int_to_ptr.vmem [resolvable:$true] %s418_s23 }
   0xe   :  { %470 = vmatpush3.msra.mxu0 %v35_v7  ;;  %s516_s24 = scalar_lea.vmem %s419_s23, 128  ;;  %p521_p1 = scmp.lt.s32.totalorder %s419_s23, %s419_s23 }
   0xf   :  { %471 = vmatprep.subr.mxu0 %v538_v1  ;;  %p517_p0 = scmp.ne.s32.totalorder %s419_s23, %s516_s24  ;;  %p522_p2 = scmp.lt.s32.totalorder %s516_s24, %s516_s24 }
  0x10   :  { %472 = vmatpush3.msra.mxu0 %v34_v8 }
  0x11   :  { %474 = vmatmul.mubr.msk.f32.vlgmr.msra.gmra.mxu0 %vm49_vm1, %v33_v9  ;;  %p523_p3 = por %p522_p2, %p521_p1 }
  0x13   :  { %p524_p4 = pnand %p523_p3, %p517_p0 }
  0xd1   :  { %v119_v14 = vpop.f32.mrf.mxu0 }
  0xd2   :  { %v120_v15 = vadd.f32 %v426_v13, %v119_v14 }
  0xd3   :  { %v475_v16 = vpop.f32.mrf.mxu0 }
  0xd4   :  { %v123_v17 = vand.u32 2147483647, %v120_v15  ;;  %vm129_vm4 = vcmp.ge.f32.partialorder %v120_v15, 0.0 }
  0xd6   :  { %v124_v18 = vsub.f32 0.0, %v123_v17 }
  0xd8   :  { %v125_v19 = vmul.f32 1.442695, %v124_v18 }
  0xda   :  { %504 = vpow2.f32 %v125_v19 }
  0xe7   :  { %v505_v20 = vpop.eup %504 }
  0xe8   :  { %v127_v21 = vadd.f32 1.0, %v505_v20 }
  0xea   :  { %506 = vrcp.f32 %v127_v21 }
  0xf7   :  { %v507_v22 = vpop.eup %506 }
  0xf8   :  { %v130_v23 = vmul.f32 %v507_v22, %v505_v20 }
  0xfa   :  { %v131_v24 = vsel %vm129_vm4, %v507_v22, %v130_v23 }
  0xfb   :  { %483 = vmatmul.mubr.msk.f32.vlgmr.msra.gmra.mxu1 %vm142_vm3, %v131_v24 }
  0xfc   :  { %489 = vmatprep.mubr.msk.f32.mxu1 %vm539_vm0, %v538_v1  ;;  %486 = vmatpush3.msk.msra.mxu1 %vm242_vm5, %v230_v25 }
  0xfd   :  { %487 = vmatprep.subr.mxu1 %v538_v1 }
  0xfe   :  { %488 = vmatpush3.msra.mxu1 %v229_v26 }
  0xff   :  { %492 = vmatprep.subr.mxu1 %v538_v1 }
 0x1bb   :  { %v216_v28 = vpop.f32.mrf.mxu1 }
 0x1bc   :  { %v217_v29 = vadd.f32 %v428_v27, %v216_v28 }
 0x1bd   :  { %v484_v30 = vpop.f32.mrf.mxu1 }
 0x1be   :  { %v220_v31 = vand.u32 2147483647, %v217_v29  ;;  %vm226_vm7 = vcmp.ge.f32.partialorder %v217_v29, 0.0 }
 0x1c0   :  { %v221_v32 = vsub.f32 0.0, %v220_v31 }
 0x1c2   :  { %v222_v33 = vmul.f32 1.442695, %v221_v32 }
 0x1c4   :  { %508 = vpow2.f32 %v222_v33 }
 0x1d1   :  { %v509_v34 = vpop.eup %508 }
 0x1d2   :  { %v224_v35 = vadd.f32 1.0, %v509_v34 }
 0x1d4   :  { %510 = vrcp.f32 %v224_v35 }
 0x1e1   :  { %v511_v36 = vpop.eup %510 }
 0x1e2   :  { %v227_v37 = vmul.f32 %v511_v36, %v509_v34 }
 0x1e4   :  { %v228_v38 = vsel %vm226_vm7, %v511_v36, %v227_v37 }
 0x1e5   :  { %490 = vmatmul.mubr.msk.f32.vlgmr.msra.gmra.mxu1 %vm238_vm6, %v228_v38 }
 0x1e6   :  { %498 = vmatprep.mubr.msk.f32.mxu1 %vm539_vm0, %v538_v1  ;;  %493 = vmatpush3.msk.msra.mxu1 %vm146_vm2, %v327_v39 }
 0x1e7   :  { %494 = vmatprep.subr.mxu1 %v538_v1 }
 0x1e8   :  { %495 = vmatpush3.msra.mxu1 %v326_v40 }
 0x1e9   :  { %496 = vmatprep.subr.mxu1 %v538_v1 }
 0x1ea   :  { %497 = vmatpush3.msra.mxu1 %v325_v41 }
 0x2a5   :  { %v312_v43 = vpop.f32.mrf.mxu1 }
 0x2a6   :  { %v313_v44 = vadd.f32 %v431_v42, %v312_v43 }
 0x2a7   :  { %v491_v45 = vpop.f32.mrf.mxu1 }
 0x2a8   :  { %v316_v46 = vand.u32 2147483647, %v313_v44  ;;  %vm322_vm8 = vcmp.ge.f32.partialorder %v313_v44, 0.0 }
 0x2aa   :  { %v317_v47 = vsub.f32 0.0, %v316_v46 }
 0x2ac   :  { %v318_v48 = vmul.f32 1.442695, %v317_v47 }
 0x2ae   :  { %512 = vpow2.f32 %v318_v48 }
 0x2bb   :  { %v513_v49 = vpop.eup %512 }
 0x2bc   :  { %v320_v50 = vadd.f32 1.0, %v513_v49 }
 0x2be   :  { %514 = vrcp.f32 %v320_v50 }
 0x2cb   :  { %v515_v51 = vpop.eup %514 }
 0x2cc   :  { %v323_v52 = vmul.f32 %v515_v51, %v513_v49 }
 0x2ce   :  { %v324_v53 = vsel %vm322_vm8, %v515_v51, %v323_v52 }
 0x2cf   :  { %499 = vmatmul.mubr.msk.f32.vlgmr.msra.gmra.mxu1 %vm142_vm3, %v324_v53 }
 0x38f   :  { %v407_v55 = vpop.f32.mrf.mxu1 }
 0x390   :  { %v408_v56 = vadd.f32 %v434_v54, %v407_v55 }
 0x391   :  { %v500_v57 = vpop.f32.mrf.mxu1 }
 0x392   :  { %411 = vst.msk [vmem:[#allocation2] sm:$0xff] %vm49_vm1, %v408_v56 }
 0x393   :  { %527 = shalt.err (!%p524_p4)
}
 0x394   :  { %421 = dma.vmem_to_hbm [thread:$0]  %s419_s23, 128, %s696_s9, [#allocation3]  }
 0x395   :  { %536 = dma.done.wait [#allocation3], 128  }
 0x396   :  { %537 = vsyncadd [#allocation3], 4294967168 }
 0x397   :  { %425 = vsyncpa [#allocation3], 1 }

</bundles_post_ra>
